<compile_context>
chip_gen: v6e
topology: v6e:2x2x1
jax: 0.10.0
libtpu: 0.0.40
codegen_flags: <defaults>
</compile_context>

<pallas_src>
import functools

import jax
import jax.numpy as jnp
from jax.experimental import pallas as pl
from jax.experimental.pallas import tpu as pltpu


def _int_or_float_pow(x, p):
    """probs**p via square-and-multiply for integer p (cheap VALU muls)."""
    if isinstance(p, int) and p >= 1:
        result = None
        base = x
        n = p
        while n:
            if n & 1:
                result = base if result is None else result * base
            n >>= 1
            if n:
                base = base * base
        return result
    return x ** p


def _soft_dice_kernel(w_ref, logits_ref, label_ref, out_ref, *, p, ignore_lb,
                      apply_ignore_mask, has_weight):
    x = logits_ref[0].astype(jnp.float32)        # (C, tile_hw), classes on sublanes
    lab = label_ref[0]                           # (1, tile_hw) int32

    cls = jax.lax.broadcasted_iota(jnp.int32, x.shape, 0)        # (C, tile_hw)
    hit = cls == lab
    if apply_ignore_mask:
        # Only needed when ignore_lb can collide with a real class id.
        hit = hit & (lab != ignore_lb)
    onehot = jnp.where(hit, 1.0, 0.0)                            # (C, tile_hw)

    # sigmoid via the tanh identity (EUP slot, not a VPU divide).  Padded
    # pixels have x = -1e30 -> tanh saturates to -1 -> probs exactly 0.
    probs = 0.5 * jnp.tanh(0.5 * x) + 0.5

    probs_p = _int_or_float_pow(probs, p)
    # onehot ** p == onehot (entries are 0/1), so it is used directly below.

    # Per-class lane reductions first (XLU), then the tiny per-class weighting.
    s_num = jnp.sum(probs * onehot, axis=-1, keepdims=True)      # (C, 1)
    s_den = jnp.sum(probs_p + onehot, axis=-1, keepdims=True)    # (C, 1)
    if has_weight:
        w = w_ref[...].astype(jnp.float32)                       # (C, 1)
        s_num = s_num * w
        s_den = s_den * w
    numer = jnp.sum(s_num)
    denom = jnp.sum(s_den)

    # Single merged (1,1,1,2) partial: [numer, denom].
    lane = jax.lax.broadcasted_iota(jnp.int32, (1, 1, 1, 2), 3)
    out_ref[...] = jnp.where(lane == 0, numer, denom)


def _vmem_limit_bytes():
    # Derive the scoped-VMEM limit from physical capacity with headroom:
    # ~96 MiB on v5e/v6e (128 MiB physical), ~48 MiB on v7x (64 MiB physical).
    try:
        cap = int(pltpu.get_tpu_info().vmem_capacity_bytes)
        return max(32 * 1024 * 1024, min(int(cap * 0.75), 96 * 1024 * 1024))
    except Exception:
        return 48 * 1024 * 1024


def _choose_tile_hw(C, HW, logits_dtype, vmem_budget_bytes):
    # Bytes per lane-column of the working set:
    #   * double-buffered logits block (sublane-padded to the dtype's granule)
    #   * double-buffered label block (int32, padded to 8 sublanes)
    #   * a few (C, tile_hw) f32 intermediates inside the kernel body.
    itemsize = jnp.dtype(logits_dtype).itemsize
    pack = max(1, 4 // itemsize)                     # values per 32-bit sublane row
    c_pad_in = pl.cdiv(C, 8 * pack) * 8 * pack       # padded rows of the input block
    c_pad_f32 = pl.cdiv(C, 8) * 8                    # padded rows of f32 intermediates
    bytes_per_col = (2 * (c_pad_in * itemsize + 8 * 4)
                     + 3 * c_pad_f32 * 4)
    t = max(128, (vmem_budget_bytes // bytes_per_col // 128) * 128)
    hw_pad128 = pl.cdiv(HW, 128) * 128
    return min(t, hw_pad128)


def batch_soft_dice_loss(logits, label, p=1, smooth=1.0, weight=None,
                         ignore_lb=255, tile_hw=None):
    N, C, H, W = logits.shape
    HW = H * W

    # Native NCHW layout (free, contiguous view) and native dtype (bf16 ok).
    x = logits.reshape(N, C, HW)
    lab = label.reshape(N, 1, HW).astype(jnp.int32)

    vmem_limit = _vmem_limit_bytes()
    if tile_hw is None:
        tile_hw = _choose_tile_hw(C, HW, x.dtype,
                                  vmem_budget_bytes=int(vmem_limit * 0.8))
    T = pl.cdiv(HW, tile_hw)
    HW_pad = T * tile_hw
    if HW_pad != HW:
        # Huge-negative logits -> probs == 0; ignore labels -> one-hot == 0.
        x = jnp.pad(x, ((0, 0), (0, 0), (0, HW_pad - HW)),
                    constant_values=-1e30)
        lab = jnp.pad(lab, ((0, 0), (0, 0), (0, HW_pad - HW)),
                      constant_values=ignore_lb)

    has_weight = weight is not None
    if has_weight:
        w = jnp.asarray(weight, jnp.float32).reshape(C, 1)
    else:
        w = jnp.ones((C, 1), jnp.float32)   # unused by the kernel (static flag)

    apply_ignore_mask = 0 <= ignore_lb < C  # e.g. 255 with small C -> dropped

    kernel = functools.partial(_soft_dice_kernel, p=p, ignore_lb=ignore_lb,
                               apply_ignore_mask=apply_ignore_mask,
                               has_weight=has_weight)

    parts = pl.pallas_call(
        kernel,
        out_shape=jax.ShapeDtypeStruct((N, T, 1, 2), jnp.float32),
        grid_spec=pltpu.PrefetchScalarGridSpec(
            num_scalar_prefetch=0,
            grid=(N, T),
            in_specs=[
                pl.BlockSpec((C, 1), lambda n, t: (0, 0)),              # weights
                pl.BlockSpec((1, C, tile_hw), lambda n, t: (n, 0, t)),  # logits
                pl.BlockSpec((1, 1, tile_hw), lambda n, t: (n, 0, t)),  # labels
            ],
            out_specs=pl.BlockSpec((1, 1, 1, 2), lambda n, t: (n, t, 0, 0)),
        ),
        compiler_params=pltpu.CompilerParams(
            dimension_semantics=("parallel", "parallel"),
            vmem_limit_bytes=vmem_limit),
    )(w, x, lab)

    numer = jnp.sum(parts[..., 0])
    denom = jnp.sum(parts[..., 1])
    return 1.0 - (2.0 * numer + smooth) / (denom + smooth)


def _reference_batch_soft_dice(logits, label, p=1, smooth=1.0, weight=None,
                               ignore_lb=255):
    # Pure-JAX reference mirroring the PyTorch module's forward.
    logits = logits.astype(jnp.float32)
    N, C, H, W = logits.shape
    ignore = label == ignore_lb
    lab = jnp.where(ignore, 0, label)
    onehot = jax.nn.one_hot(lab, C, axis=1, dtype=jnp.float32)     # (N,C,H,W)
    onehot = jnp.where(ignore[:, None, :, :], 0.0, onehot)
    probs = jax.nn.sigmoid(logits)
    numer = jnp.sum(probs * onehot, axis=(2, 3))                   # (N, C)
    denom = jnp.sum(probs ** p + onehot ** p, axis=(2, 3))         # (N, C)
    if weight is not None:
        wv = jnp.asarray(weight, jnp.float32).reshape(1, -1)
        numer = numer * wv
        denom = denom * wv
    return 1.0 - (2.0 * jnp.sum(numer) + smooth) / (jnp.sum(denom) + smooth)


if __name__ == "__main__":
    key = jax.random.PRNGKey(0)
    k1, k2, k3 = jax.random.split(key, 3)

    N, C, H, W = 2, 4, 16, 16
    ignore_lb = 255

    logits = jax.random.normal(k1, (N, C, H, W), dtype=jnp.float32)
    label_base = jax.random.randint(k2, (N, H, W), 0, C, dtype=jnp.int32)
    ignore_mask = jax.random.uniform(k3, (N, H, W)) < 0.1
    label = jnp.where(ignore_mask, ignore_lb, label_base)

    # Default config (p=1, smooth=1, weight=None) — the module's defaults.
    out = batch_soft_dice_loss(logits, label, ignore_lb=ignore_lb)
    out = jax.block_until_ready(out)
    ref = _reference_batch_soft_dice(logits, label, ignore_lb=ignore_lb)
    assert jnp.allclose(out, ref, rtol=1e-5, atol=1e-5), (out, ref)

    # Weighted / p=2 config to exercise the general path.
    wgt = [0.5, 1.0, 1.5, 2.0]
    out2 = batch_soft_dice_loss(logits, label, p=2, smooth=0.5,
                                weight=wgt, ignore_lb=ignore_lb)
    out2 = jax.block_until_ready(out2)
    ref2 = _reference_batch_soft_dice(logits, label, p=2, smooth=0.5,
                                      weight=wgt, ignore_lb=ignore_lb)
    assert jnp.allclose(out2, ref2, rtol=1e-5, atol=1e-5), (out2, ref2)

    # Native bf16 logits (no wrapper cast) + p=3 integer-pow chain.
    logits_bf16 = logits.astype(jnp.bfloat16)
    out3 = batch_soft_dice_loss(logits_bf16, label, p=3, ignore_lb=ignore_lb)
    out3 = jax.block_until_ready(out3)
    ref3 = _reference_batch_soft_dice(logits_bf16, label, p=3,
                                      ignore_lb=ignore_lb)
    assert jnp.allclose(out3, ref3, rtol=1e-4, atol=1e-4), (out3, ref3)

    # In-range ignore label (exercises the runtime valid-mask branch).
    label_in = jnp.where(ignore_mask, 2, label_base)
    out4 = batch_soft_dice_loss(logits, label_in, ignore_lb=2)
    out4 = jax.block_until_ready(out4)
    ref4 = _reference_batch_soft_dice(logits, label_in, ignore_lb=2)
    assert jnp.allclose(out4, ref4, rtol=1e-5, atol=1e-5), (out4, ref4)

    print("KERNEL_OK")
</pallas_src>

<mosaic_0001>
module attributes {stable_mosaic.version = 11 : i64} {
  func.func @_soft_dice_kernel(%arg0: i32, %arg1: i32, %arg2: memref<4x1xf32, #tpu.memory_space<vmem>>, %arg3: memref<1x4x256xf32, #tpu.memory_space<vmem>>, %arg4: memref<1x1x256xi32, #tpu.memory_space<vmem>>, %arg5: memref<1x1x1x2xf32, #tpu.memory_space<vmem>>) attributes {dimension_semantics = [#tpu.dimension_semantics<parallel>, #tpu.dimension_semantics<parallel>], iteration_bounds = array<i64: 2, 1>, scalar_prefetch = 0 : i64, scratch_operands = 0 : i64, tpu.core_type = #tpu.core_type<tc>, window_params = [{pipeline_mode = #tpu.pipeline_mode<synchronous>, transform_indices = @transform_0, window_bounds = array<i64: 4, 1>}, {transform_indices = @transform_1, window_bounds = array<i64: 1, 4, 256>}, {transform_indices = @transform_2, window_bounds = array<i64: 1, 1, 256>}, {transform_indices = @transform_3, window_bounds = array<i64: 1, 1, 1, 2>}]} {
    %c0 = arith.constant 0 : index
    %c0_0 = arith.constant 0 : index
    %c0_1 = arith.constant 0 : index
    %0 = vector.load %arg3[%c0, %c0_0, %c0_1] : memref<1x4x256xf32, #tpu.memory_space<vmem>>, vector<1x4x256xf32>
    %1 = vector.shape_cast %0 : vector<1x4x256xf32> to vector<4x256xf32>
    %c0_2 = arith.constant 0 : index
    %c0_3 = arith.constant 0 : index
    %c0_4 = arith.constant 0 : index
    %2 = vector.load %arg4[%c0_2, %c0_3, %c0_4] : memref<1x1x256xi32, #tpu.memory_space<vmem>>, vector<1x1x256xi32>
    %3 = vector.shape_cast %2 : vector<1x1x256xi32> to vector<1x256xi32>
    %4 = tpu.iota {dimensions = array<i32: 0>} : vector<4x256xi32>
    %5 = vector.broadcast %3 : vector<1x256xi32> to vector<4x256xi32>
    %6 = arith.cmpi eq, %4, %5 : vector<4x256xi32>
    %cst = arith.constant 1.000000e+00 : f32
    %cst_5 = arith.constant 0.000000e+00 : f32
    %7 = vector.broadcast %cst : f32 to vector<4x256xf32>
    %8 = vector.broadcast %cst_5 : f32 to vector<4x256xf32>
    %9 = arith.select %6, %7, %8 : vector<4x256xi1>, vector<4x256xf32>
    %cst_6 = arith.constant 5.000000e-01 : f32
    %10 = vector.broadcast %cst_6 : f32 to vector<4x256xf32>
    %11 = arith.mulf %10, %1 : vector<4x256xf32>
    %12 = math.tanh %11 : vector<4x256xf32>
    %cst_7 = arith.constant 5.000000e-01 : f32
    %13 = vector.broadcast %cst_7 : f32 to vector<4x256xf32>
    %14 = arith.mulf %13, %12 : vector<4x256xf32>
    %cst_8 = arith.constant 5.000000e-01 : f32
    %15 = vector.broadcast %cst_8 : f32 to vector<4x256xf32>
    %16 = arith.addf %14, %15 : vector<4x256xf32>
    %17 = arith.mulf %16, %9 : vector<4x256xf32>
    %cst_9 = arith.constant dense<0.000000e+00> : vector<4xf32>
    %18 = vector.multi_reduction <add>, %17, %cst_9 [1] : vector<4x256xf32> to vector<4xf32>
    %19 = vector.shape_cast %18 : vector<4xf32> to vector<4x1xf32>
    %20 = arith.addf %16, %9 : vector<4x256xf32>
    %cst_10 = arith.constant dense<0.000000e+00> : vector<4xf32>
    %21 = vector.multi_reduction <add>, %20, %cst_10 [1] : vector<4x256xf32> to vector<4xf32>
    %22 = vector.shape_cast %21 : vector<4xf32> to vector<4x1xf32>
    %23 = vector.shape_cast %19 : vector<4x1xf32> to vector<1x4x1xf32>
    %cst_11 = arith.constant dense<0.000000e+00> : vector<1xf32>
    %24 = vector.multi_reduction <add>, %23, %cst_11 [1, 2] : vector<1x4x1xf32> to vector<1xf32>
    %25 = vector.shape_cast %24 : vector<1xf32> to vector<1x1x1xf32>
    %26 = vector.extract %25[0, 0, 0] : f32 from vector<1x1x1xf32>
    %27 = vector.shape_cast %22 : vector<4x1xf32> to vector<1x4x1xf32>
    %cst_12 = arith.constant dense<0.000000e+00> : vector<1xf32>
    %28 = vector.multi_reduction <add>, %27, %cst_12 [1, 2] : vector<1x4x1xf32> to vector<1xf32>
    %29 = vector.shape_cast %28 : vector<1xf32> to vector<1x1x1xf32>
    %30 = vector.extract %29[0, 0, 0] : f32 from vector<1x1x1xf32>
    %31 = tpu.iota {dimensions = array<i32: 3>} : vector<1x1x1x2xi32>
    %c0_i32 = arith.constant 0 : i32
    %32 = vector.broadcast %c0_i32 : i32 to vector<1x1x1x2xi32>
    %33 = arith.cmpi eq, %31, %32 : vector<1x1x1x2xi32>
    %34 = vector.broadcast %26 : f32 to vector<1x1x1x2xf32>
    %35 = vector.broadcast %30 : f32 to vector<1x1x1x2xf32>
    %36 = arith.select %33, %34, %35 : vector<1x1x1x2xi1>, vector<1x1x1x2xf32>
    %c0_13 = arith.constant 0 : index
    %c0_14 = arith.constant 0 : index
    %c0_15 = arith.constant 0 : index
    %c0_16 = arith.constant 0 : index
    %37 = vector.load %arg5[%c0_13, %c0_14, %c0_15, %c0_16] : memref<1x1x1x2xf32, #tpu.memory_space<vmem>>, vector<1x1x1x2xf32>
    tpu.vector_store %arg5[%c0_13, %c0_14, %c0_15, %c0_16], %36 {strides = array<i32>} : memref<1x1x1x2xf32, #tpu.memory_space<vmem>>, vector<1x1x1x2xf32>,
    return
  }
  func.func @transform_0(%arg0: i32, %arg1: i32) -> (i32, i32) {
    %c0_i32 = arith.constant 0 : i32
    %c0_i32_0 = arith.constant 0 : i32
    %c0_i32_1 = arith.constant 0 : i32
    return %c0_i32, %c0_i32_0 : i32, i32
  }
  func.func @transform_1(%arg0: i32, %arg1: i32) -> (i32, i32, i32) {
    %c0_i32 = arith.constant 0 : i32
    %c0_i32_0 = arith.constant 0 : i32
    return %arg0, %c0_i32, %arg1 : i32, i32, i32
  }
  func.func @transform_2(%arg0: i32, %arg1: i32) -> (i32, i32, i32) {
    %c0_i32 = arith.constant 0 : i32
    %c0_i32_0 = arith.constant 0 : i32
    return %arg0, %c0_i32, %arg1 : i32, i32, i32
  }
  func.func @transform_3(%arg0: i32, %arg1: i32) -> (i32, i32, i32, i32) {
    %c0_i32 = arith.constant 0 : i32
    %c0_i32_0 = arith.constant 0 : i32
    %c0_i32_1 = arith.constant 0 : i32
    return %arg0, %arg1, %c0_i32, %c0_i32_0 : i32, i32, i32, i32
  }
}

</mosaic_0001>

<bundles_post_ra>
// kernel: tpu_custom_call.1
= control target key start
LH: loop header
LB: loop body
LE: loop exit
PB: predicated region body
PF: predicated region fallthrough
CT: control target
= control target key end

     0   :  { %8 = vsyncpa [#allocation3], 0  ;;  %s779_s0 = inlined_call_operand.vmem [shape: f32[4,1], index: 0, kind: input, shape index: {}]   ;;  %s780_s1 = inlined_call_operand.hbm [shape: f32[2,4,256], index: 1, kind: input, shape index: {}]   ;;  %s781_s2 = inlined_call_operand.vmem [shape: s32[2,1,256], index: 2, kind: input, shape index: {}]   ;;  %s782_s3 = inlined_call_operand.hbm [shape: f32[2,1,1,2], index: 3, kind: output, shape index: {}]  }
   0x1   :  { %10 = vsyncpa [#allocation3 + $0x1], 0 }
   0x2   :  { %11 = vsyncpa [#allocation4], 0 }
   0x3   :  { %13 = vsyncpa [#allocation4 + $0x1], 0  ;;  %s633_s12 = smov 0   ;;  %s635_s13 = smov 0  }
   0x4   :  { %s637_s14 = smov 0   ;;  %s639_s0 = smov 0  }
   0x5   :  { %s641_s15 = smov 0   ;;  %s643_s16 = smov 0  }
   0x6 LB: > { %s417_s17 = sadd.s32 4294967295, %s608_s16   ;;  %s418_s18 = sadd.s32 4294967294, %s608_s16   ;;  %s608_s16 = sphi %s643_s16, %s19_s16   ;;  %s604_s15 = sphi %s641_s15, %s794_s15   ;;  %s600_s0 = sphi %s639_s0, %s793_s0   ;;  %s596_s14 = sphi %s637_s14, %s792_s14   ;;  %s592_s13 = sphi %s635_s13, %s791_s13   ;;  %s588_s12 = sphi %s633_s12, %s790_s12  }
   0x7   : > { %s31_s19 = sadd.s32 1, %s604_s15  ;;  %s61_s20 = sadd.s32 1, %s596_s14 }
   0x8   : > { %p33_p0 = scmp.ge.s32.totalorder %s31_s19, 2  ;;  %p68_p1 = scmp.ne.s32.totalorder %s596_s14, %s592_s13 }
   0x9   : > { %p69_p2 = scmp.eq.s32.totalorder %s608_s16, 0  ;;  %p74_p3 = scmp.ne.s32.totalorder %s592_s13, %s588_s12 }
   0xa   : > { %s796_s19 = smov (%p33_p0, %s31_s19), 0  ;;  %p75_p5 = scmp.eq.s32.totalorder %s417_s17, 0 }
   0xb   : > { %p674_p4 = por %p69_p2, %p68_p1  ;;  %s56_s22 = ssub.s32 %s604_s15, %s796_s19 }
   0xc   : > { %p128_p6 = scmp.eq.s32.totalorder %s417_s17, 1  ;;  %p59_p7 = scmp.eq.s32.totalorder %s56_s22, 0 }
   0xd   : > { %p680_p8 = por %p75_p5, %p74_p3  ;;  %p134_p10 = scmp.eq.s32.totalorder %s418_s18, 1 }
   0xe   : > { %p684_p9 = por %p128_p6, %p68_p1  ;;  %p447_p13 = scmp.lt.s32.totalorder %s608_s16, 2 }
   0xf   : > { %s689_s25 = scalar_select %p59_p7, %s596_s14, %s61_s20  }
  0x10   : > { %p691_p11 = por %p134_p10, %p74_p3  ;;  %s157_s27 = sand.u32 1, %s596_s14  }
  0x11   : > { %s421_s28 = sshll.u32 %s157_s27, 3  ;;  %s430_s29 = sshll.u32 %s604_s15, 7 }
  0x12   : > { %s786_s26 = scalar_select %p691_p11, 1, 0 }
  0x13   : > { %s169_s5 = scalar_lea.hbm %s780_s1, %s430_s29  ;;  %s161_s6 = scalar_lea.vmem [#allocation2], %s421_s28 }
  0x14   : > { %s171_s7 = sshll.u32 %s161_s6, 4  ;;  %p704_p0 = pnand %p447_p13, %p674_p4  ;;  %s172_s7 = int_to_ptr.vmem [resolvable:$true] %s171_s7 }
  0x15   : > { %p424_p1 = scmp.ge.s32.totalorder %s608_s16, 1  ;;  %p188_p2 = scmp.lt.s32.totalorder %s608_s16, 3 }
  0x16   : > { %s158_s9 = scalar_lea.sflag [#allocation3], %s157_s27  ;;  %p502_p3 = pneg %p704_p0 }
  0x17   : > { %s513_s10 = scalar_lea.vmem %s172_s7, 128  ;;  %s610_s11 = smov [#allocation2]  }
  0x18   : > { %p514_p5 = scmp.ne.s32.totalorder %s172_s7, %s513_s10  ;;  %s518_s17 = sshll.u32 %s610_s11, 4  ;;  %s519_s17 = int_to_ptr.vmem [resolvable:$false] %s518_s17 }
  0x19   : > { %s520_s18 = scalar_lea.vmem %s519_s17, 256  ;;  %p521_p10 = scmp.lt.s32.totalorder %s172_s7, %s519_s17 }
  0x1a   : > { %p516_p6 = pnand %p514_p5, %p502_p3  ;;  %p522_p12 = scmp.lt.s32.totalorder %s520_s18, %s513_s10 }
  0x1c   : > { %p517_p7 = pneg %p516_p6  ;;  %p523_p4 = por %p522_p12, %p521_p10 }
  0x1e   : > { %p524_p13 = pnand %p523_p4, %p517_p7 }
  0x20   : > { %527 = shalt.err (!%p524_p13)
}
  0x21   : > { %442 = dma.hbm_to_vmem [thread:$0]  (!%p704_p0), %s169_s5, 128, %s172_s7, %s158_s9  }
  0x22   : > { %p189_p11 = pnand %p424_p1, %p188_p2 }
  0x23   : > { %s719_s20 = sand.u32 (!%p189_p11), 1, %s592_s13  }
  0x24   : > { %192 = sbr.rel (%p189_p11) target bundleno = 428 (0x1ac), region = 32  ;;  %s425_s21 = sshll.u32 (!%p189_p11), %s719_s20, 3 }
  0x25   : > { %s195_s22 = scalar_lea.sflag (!%p189_p11), [#allocation3], %s719_s20  ;;  %s198_s27 = scalar_lea.vmem (!%p189_p11), [#allocation2], %s425_s21 }
  0x29   : > { %579 = dma.done.wait (%p680_p8), %s195_s22, 128  }
  0x2a   : > { %581 = vsyncadd (%p680_p8), %s195_s22, 4294967168  ;;  %p230_p12 = scmp.lt.s32.totalorder %s600_s0, 1  ;;  %v240_v0 = vlaneseq  ;;  %v238_v2 = vld [vmem:[%s198_s27] sm:$0xff]  ;;  %v611_v9 = vmov 0.0   ;;  %vm266_vm2 = vcmask 1043456   ;;  %vm281_vm3 = vcmask 3072  }
  0x2b   : > { %v254_v3 = vmul.f32 0.5, %v238_v2  ;;  %s427_s23 = sshll.u32 %s600_s0, 4  ;;  %s227_s7 = scalar_lea.vmem [#allocation5], %s719_s20  ;;  %vm308_vm5 = vcmask 8192  }
  0x2c   : > { %s231_s28 = scalar_select %p230_p12, %s600_s0, 1  ;;  %v241_v1 = vshrl.u32 %v240_v0, 7  ;;  %v303_v44 = vand.u32 127, %v240_v0 }
  0x2d   : > { %498 = vtanh.f32 %v254_v3  ;;  %s324_s8 = sshll.u32 %s227_s7, 4  ;;  %s737_s17 = scalar_lea.hbm %s782_s3, %s427_s23  ;;  %s325_s8 = int_to_ptr.vmem [resolvable:$true] %s324_s8 }
  0x2e   : > { %s426_s29 = sshll.u32 %s231_s28, 1  ;;  %v244_v4 = vsub.s32 0, %v241_v1  ;;  %v248_v5 = vsub.s32 1, %v241_v1  ;;  %vm304_vm4 = vcmp.eq.s32.totalorder %v303_v44, 0  ;;  %s311_s18 = scalar_lea.sflag [#allocation4], %s719_s20 }
  0x2f   : > { %s236_s5 = scalar_lea.vmem %s781_s2, %s426_s29  ;;  %s528_s21 = scalar_lea.vmem %s325_s8, 16 }
  0x30   : > { %v239_v6 = vld [vmem:[%s236_s5] sm:$0x3]  ;;  %p529_p8 = scmp.ne.s32.totalorder %s325_s8, %s528_s21  ;;  %s612_s0 = smov [#allocation5]  }
  0x31   : > { %v245_v7 = vrot.slane %v239_v6, %v244_v4  ;;  %v249_v8 = vrot.slane %v239_v6, %v248_v5  ;;  %s532_s22 = sshll.u32 %s612_s0, 4  ;;  %s533_s22 = int_to_ptr.vmem [resolvable:$false] %s532_s22 }
  0x32   : > { %p530_p11 = pnand %p529_p8, %p684_p9  ;;  %s534_s27 = scalar_lea.vmem %s533_s22, 32 }
  0x33   : > { %vm250_vm0 = vcmp.eq.s32.totalorder %v241_v1, %v245_v7  ;;  %vm251_vm1 = vcmp.eq.s32.totalorder %v241_v1, %v249_v8  ;;  %p535_p1 = scmp.lt.s32.totalorder %s325_s8, %s533_s22  ;;  %p536_p2 = scmp.lt.s32.totalorder %s534_s27, %s528_s21 }
  0x34   : > { %v252_v10 = vsel %vm250_vm0, 1.0, %v611_v9  ;;  %v253_v11 = vsel %vm251_vm1, 1.0, %v611_v9  ;;  %p531_p0 = pneg %p530_p11 }
  0x35   : > { %v260_v14 = vcombine.low %v252_v10, %v253_v11  ;;  %p537_p3 = por %p536_p2, %p535_p1 }
  0x37   : > { %p538_p5 = pnand %p537_p3, %p531_p0 }
  0x3a   : > { %v499_v12 = vpop.eup %498 }
  0x3b   : > { %v256_v13 = vmul.f32 0.5, %v499_v12 }
  0x3d   : > { %v257_v15 = vadd.f32 0.5, %v256_v13 }
  0x3f   : > { %v262_v16 = vmul.f32 %v260_v14, %v257_v15  ;;  %v272_v17 = vadd.f32 %v260_v14, %v257_v15 }
  0x41   : > { %v264_v18 = vcombine.high %v262_v16, %v262_v16  ;;  %v267_v19 = vsel %vm266_vm2, %v262_v16, 0.0  ;;  %v274_v20 = vcombine.high %v272_v17, %v272_v17  ;;  %v276_v22 = vsel %vm266_vm2, %v272_v17, 0.0 }
  0x43   : > { %v268_v21 = vsel %vm266_vm2, %v264_v18, 0.0  ;;  %v277_v23 = vsel %vm266_vm2, %v274_v20, 0.0 }
  0x44   : > { %v269_v24 = vadd.f32 %v268_v21, %v267_v19  ;;  %v278_v25 = vadd.f32 %v277_v23, %v276_v22 }
  0x46   : > { %270 = vadd.xlane.f32.xlu0 %v269_v24 }
  0x4a   : > { %279 = vadd.xlane.f32.xlu0 %v278_v25 }
  0xcf   : > { %v271_v26 = vpop.xlane.xlu0 %270 }
  0xd0   : > { %v282_v27 = vsel %vm281_vm3, %v271_v26, 0.0 }
  0xd1   : > { %283 = vadd.xlane.f32.xlu1 %v282_v27 }
  0xd3   : > { %v280_v28 = vpop.xlane.xlu0 %279 }
  0xd4   : > { %v292_v29 = vsel %vm281_vm3, %v280_v28, 0.0 }
  0xd5   : > { %293 = vadd.xlane.f32.xlu1 %v292_v29 }
 0x15a   : > { %v284_v30 = vpop.xlane.xlu1 %283 }
 0x15b   : > { %v285_v31 = vrot.slane %v284_v30, 4 }
 0x15d   : > { %v286_v32 = vadd.f32 %v285_v31, %v284_v30 }
 0x15e   : > { %v294_v33 = vpop.xlane.xlu1 %293 }
 0x15f   : > { %v287_v34 = vrot.slane %v286_v32, 2  ;;  %v295_v35 = vrot.slane %v294_v33, 4 }
 0x161   : > { %v296_v36 = vadd.f32 %v295_v35, %v294_v33  ;;  %v288_v37 = vadd.f32 %v287_v34, %v286_v32 }
 0x163   : > { %v297_v38 = vrot.slane %v296_v36, 2  ;;  %v289_v39 = vrot.slane %v288_v37, 1 }
 0x165   : > { %v298_v40 = vadd.f32 %v297_v38, %v296_v36  ;;  %v290_v41 = vadd.f32 %v289_v39, %v288_v37 }
 0x167   : > { %431 = vpush %v290_v41  ;;  %v299_v42 = vrot.slane %v298_v40, 1 }
 0x169   : > { %v300_v43 = vadd.f32 %v299_v42, %v298_v40 }
 0x16b   : > { %433 = vpush %v300_v43 }
 0x198   : > { %s432_s6 = spop %431 }
 0x199   : > { %v305_v45 = vstv %s432_s6 }
 0x19c   : > { %s434_s9 = spop %433 }
 0x19d   : > { %v306_v46 = vstv %s434_s9 }
 0x19e   : > { %v307_v47 = vsel %vm304_vm4, %v305_v45, %v306_v46 }
 0x19f   : > { %309 = vst.msk [vmem:[%s227_s7] sm:$0x1] %vm308_vm5, %v307_v47 }
 0x1a0   : > { %541 = shalt.err (!%p538_p5)
}
 0x1a1   : > { %s542_s28 = scalar_lea.hbm %s737_s17, 16  ;;  %s546_s30 = scalar_lea.hbm %s782_s3, 32 }
 0x1a2   : > { %p543_p6 = scmp.ne.s32.totalorder %s737_s17, %s542_s28  ;;  %p547_p4 = scmp.lt.s32.totalorder %s737_s17, %s782_s3 }
 0x1a3   : > { %p548_p13 = scmp.lt.s32.totalorder %s546_s30, %s542_s28 }
 0x1a4   : > { %p544_p7 = pnand %p543_p6, %p684_p9 }
 0x1a5   : > { %p549_p12 = por %p548_p13, %p547_p4 }
 0x1a6   : > { %p545_p10 = pneg %p544_p7 }
 0x1a8   : > { %p550_p8 = pnand %p549_p12, %p545_p10 }
 0x1aa   : > { %553 = shalt.err (!%p550_p8)
}
 0x1ab   : > { %437 = dma.vmem_to_hbm [thread:$0]  (%p684_p9), %s325_s8, 16, %s737_s17, %s311_s18  }
 0x1ac PF: > { %s336_s23 = sand.u32 1, %s588_s12   ;;  %p788_p11 = scmp.ne.s32.totalorder %s786_s26, 0 }
 0x1ad   : > { %p789_p0 = scmp.ge.s32.totalorder %s608_s16, 2  ;;  %s337_s6 = scalar_lea.sflag [#allocation4], %s336_s23 }
 0x1af   : > { %p444_p1 = pnand %p789_p0, %p788_p11 }
 0x1b1   : > { %p445_p2 = pneg %p444_p1 }
 0x1b3   : > { %583 = dma.done.wait (%p445_p2), %s337_s6, 16  }
 0x1b4   : > { %585 = vsyncadd (%p445_p2), %s337_s6, 4294967280  ;;  %s19_s16 = sadd.s32 1, %s608_s16   ;;  %s790_s12 = smov %s592_s13 }
 0x1b5   : > { %p16_p3 = scmp.ge.s32.totalorder %s19_s16, 4   ;;  %s791_s13 = smov %s596_s14 }
 0x1b6   : > { %s792_s14 = smov %s689_s25  ;;  %s793_s0 = smov %s604_s15 }
 0x1b7   : > { %s794_s15 = smov %s796_s19  ;;  %18 = sbr.rel (!%p16_p3) target bundleno = 6 (0x6), region = 80 }
 0x1bc   :  { %341 = vsyncpa [#allocation3], 1 }
 0x1bd   :  { %343 = vsyncpa [#allocation3 + $0x1], 1 }
 0x1be   :  { %344 = vsyncpa [#allocation4], 1 }
 0x1bf   :  { %346 = vsyncpa [#allocation4 + $0x1], 1 }

</bundles_post_ra>
